<compile_context>
chip_gen: v5e
topology: v5e:2x2
jax: 0.10.0
libtpu: 0.0.40
codegen_flags: <defaults>
</compile_context>

<pallas_src>
import jax
import jax.numpy as jnp
from jax.experimental import pallas as pl
from jax.experimental.pallas import tpu as pltpu


def abs_scale_kernel(x_ref, o_ref):
    # out = ones_like(linear(x^T)) * abs(x) * 5  ==  abs(x) * 5
    o_ref[...] = (jnp.abs(x_ref[...]) * 5.0).astype(o_ref.dtype)


def _largest_tile(dim, unit, cap):
    """Largest multiple of `unit` that divides `dim`, capped at `cap`."""
    best = unit
    t = unit
    limit = min(dim, cap)
    while t <= limit:
        if dim % t == 0:
            best = t
        t += unit
    return best


def model_forward(x1, weight=None, bias=None):
    # weight/bias accepted for API parity with the PyTorch module; the Linear
    # layer provably never affects the output, so they are not used.
    B, N, M = x1.shape
    dtype = x1.dtype
    cost = pl.CostEstimate(
        flops=2 * B * N * M,            # abs + mul
        transcendentals=0,
        bytes_accessed=2 * B * N * M * jnp.dtype(dtype).itemsize,
    )

    if N % 8 == 0 and M % 128 == 0:
        # Lane-dense tiled path for real shapes: blocks are multiples of
        # (8, 128) so stores are unmasked vst, grid axes fully parallel.
        tn = _largest_tile(N, 8, 512)
        tm = _largest_tile(M, 128, 2048)
        return pl.pallas_call(
            abs_scale_kernel,
            out_shape=jax.ShapeDtypeStruct((B, N, M), dtype),
            grid_spec=pltpu.PrefetchScalarGridSpec(
                num_scalar_prefetch=0,
                grid=(B, N // tn, M // tm),
                in_specs=[pl.BlockSpec((1, tn, tm), lambda b, i, j: (b, i, j))],
                out_specs=pl.BlockSpec((1, tn, tm), lambda b, i, j: (b, i, j)),
            ),
            compiler_params=pltpu.CompilerParams(
                dimension_semantics=("parallel", "parallel", "parallel")),
            cost_estimate=cost,
        )(x1)

    # Tiny-shape path (the module's (1,2,2)): single invocation, whole array
    # resident in VMEM, zero grid/pipeline overhead.
    return pl.pallas_call(
        abs_scale_kernel,
        out_shape=jax.ShapeDtypeStruct((B, N, M), dtype),
        in_specs=[pl.BlockSpec(memory_space=pltpu.MemorySpace.VMEM)],
        out_specs=pl.BlockSpec(memory_space=pltpu.MemorySpace.VMEM),
        cost_estimate=cost,
    )(x1)


if __name__ == "__main__":
    key = jax.random.PRNGKey(0)
    kx, kw, kb = jax.random.split(key, 3)

    # Input matches the module's x1 = torch.randn(1, 2, 2)
    x1 = jax.random.normal(kx, (1, 2, 2), dtype=jnp.float32)

    # Deterministic init mimicking torch.nn.Linear(2, 2) — kept only for
    # signature parity; it has zero effect on the output.
    in_features, out_features = 2, 2
    bound = 1.0 / (in_features ** 0.5)
    weight = jax.random.uniform(kw, (out_features, in_features),
                                minval=-bound, maxval=bound, dtype=jnp.float32)
    bias = jax.random.uniform(kb, (out_features,),
                              minval=-bound, maxval=bound, dtype=jnp.float32)

    out = model_forward(x1, weight, bias)
    out = jax.block_until_ready(out)

    # Reference: the full original math (permute -> linear -> ones_like -> abs*5)
    v1 = jnp.swapaxes(x1, 1, 2)
    v2 = jnp.einsum("bmn,on->bmo", v1, weight,
                    preferred_element_type=jnp.float32) + bias[None, None, :]
    ref = jnp.ones_like(v2) * jnp.abs(x1) * 5.0

    assert out.shape == (1, 2, 2)
    assert out.dtype == x1.dtype
    assert jnp.allclose(out, ref, atol=1e-6), (out, ref)

    print("KERNEL_OK")
</pallas_src>

<mosaic_0001>
module attributes {stable_mosaic.version = 11 : i64} {
  func.func @abs_scale_kernel(%arg0: memref<1x2x2xf32, #tpu.memory_space<vmem>>, %arg1: memref<1x2x2xf32, #tpu.memory_space<vmem>>) attributes {dimension_semantics = [], scalar_prefetch = 0 : i64, scratch_operands = 0 : i64, tpu.core_type = #tpu.core_type<tc>} {
    %c0 = arith.constant 0 : index
    %c0_0 = arith.constant 0 : index
    %c0_1 = arith.constant 0 : index
    %0 = vector.load %arg0[%c0, %c0_0, %c0_1] : memref<1x2x2xf32, #tpu.memory_space<vmem>>, vector<1x2x2xf32>
    %1 = math.absf %0 : vector<1x2x2xf32>
    %cst = arith.constant 5.000000e+00 : f32
    %2 = vector.broadcast %cst : f32 to vector<1x2x2xf32>
    %3 = arith.mulf %1, %2 : vector<1x2x2xf32>
    %c0_2 = arith.constant 0 : index
    %c0_3 = arith.constant 0 : index
    %c0_4 = arith.constant 0 : index
    %4 = vector.load %arg1[%c0_2, %c0_3, %c0_4] : memref<1x2x2xf32, #tpu.memory_space<vmem>>, vector<1x2x2xf32>
    tpu.vector_store %arg1[%c0_2, %c0_3, %c0_4], %3 {strides = array<i32>} : memref<1x2x2xf32, #tpu.memory_space<vmem>>, vector<1x2x2xf32>,
    return
  }
}

</mosaic_0001>

<bundles_post_ra>
// kernel: tpu_custom_call.1
= control target key start
LH: loop header
LB: loop body
LE: loop exit
PB: predicated region body
PF: predicated region fallthrough
CT: control target
= control target key end

     0   :  { %6 = vsyncpa [#allocation3], 0  ;;  %s117_s0 = inlined_call_operand.hbm [shape: f32[1,2,2], index: 0, kind: input, shape index: {}]   ;;  %s118_s1 = inlined_call_operand.hbm [shape: f32[1,2,2], index: 1, kind: output, shape index: {}]  }
   0x1   :  { %7 = vsyncpa [#allocation4], 0  ;;  %s13_s8 = sshll.u32 %s117_s0, 4  ;;  %s99_s9 = smov [#allocation2]   ;;  %s14_s8 = int_to_ptr.hbm [resolvable:$true] %s13_s8 }
   0x2   :  { %s15_s10 = sshll.u32 %s99_s9, 4  ;;  %s16_s10 = int_to_ptr.vmem [resolvable:$true] %s15_s10 }
   0x3   :  { %18 = dma.hbm_to_vmem [thread:$0]  %s14_s8, 32, %s16_s10, [#allocation3]  }
   0x4   :  { %95 = dma.done.wait [#allocation3], 32  }
   0x5   :  { %96 = vsyncadd [#allocation3], 4294967264  ;;  %v23_v0 = vld [vmem:[#allocation2] sm:$0x3]  ;;  %s100_s11 = smov [#allocation5]   ;;  %s35_s15 = sshll.u32 %s118_s1, 4  ;;  %s36_s15 = int_to_ptr.hbm [resolvable:$true] %s35_s15 }
   0x6   :  { %s33_s12 = sshll.u32 %s100_s11, 4  ;;  %v24_v1 = vand.u32 2147483647, %v23_v0  ;;  %vm26_vm0 = vcmask 9216   ;;  %s34_s12 = int_to_ptr.vmem [resolvable:$true] %s33_s12 }
   0x8   :  { %v25_v2 = vmul.f32 5.0, %v24_v1 }
   0xa   :  { %27 = vst.msk [vmem:[#allocation5] sm:$0x3] %vm26_vm0, %v25_v2 }
   0xb   :  { %38 = dma.vmem_to_hbm [thread:$0]  %s34_s12, 32, %s36_s15, [#allocation4]  }
   0xc   :  { %97 = dma.done.wait [#allocation4], 32  }
   0xd   :  { %98 = vsyncadd [#allocation4], 4294967264 }
   0xe   :  { %43 = vsyncpa [#allocation3], 1 }
   0xf   :  { %44 = vsyncpa [#allocation4], 1 }

</bundles_post_ra>
